<compile_context>
chip_gen: v5e
topology: v5e:2x2
jax: 0.10.0
libtpu: 0.0.40
codegen_flags: <defaults>
</compile_context>

<pallas_src>
import jax
import jax.numpy as jnp
from jax.experimental import pallas as pl
from jax.experimental.pallas import tpu as pltpu


def _digitcaps2_kernel(u_ref, w_ref, o_ref):
    """u_ref: (TB, R, CD) prediction tile (input dtype).
       w_ref: (R, CD)     f32 routing coefficients, expanded over the pose dim D.
       o_ref: (TB, CD)    output tile s_j (input dtype)."""
    u = u_ref[...].astype(jnp.float32)
    w = w_ref[...]
    # Whole-block fused multiply + reduction over the route (second-minor /
    # sublane) axis; one unmasked lane-dense store, w shared across all rows.
    o_ref[...] = jnp.sum(u * w[None, :, :], axis=1).astype(o_ref.dtype)


def digitcaps2_forward(u_hat, b_ij):
    """u_hat: (B, R, C, D, 1) (PyTorch layout).
       b_ij : (1, R, C, 1)    float32 routing coefficients.
       Returns s_j of shape (B, C, D, 1), same dtype as u_hat."""
    B, R, C, D, _ = u_hat.shape
    CD = C * D

    # Free row-major views / tiny host-side expansion (no HBM relayout of u_hat).
    u2 = u_hat.reshape(B, R, CD)
    w_cd = jnp.broadcast_to(
        b_ij.reshape(R, C).astype(jnp.float32)[:, :, None], (R, C, D)
    ).reshape(R, CD)

    # Sublane granularity for the (tile_b, CD) output block:
    # f32 -> 8, bf16 -> 16, int8/fp8 -> 32.
    sub = max(8, 32 // jnp.dtype(u_hat.dtype).itemsize)
    tile_b = B if B <= sub else sub
    n_tiles = pl.cdiv(B, tile_b)   # ragged tail -> masked edge block (no padding copy)

    itemsize = jnp.dtype(u_hat.dtype).itemsize
    cost = pl.CostEstimate(
        flops=2 * B * R * CD,
        transcendentals=0,
        bytes_accessed=B * R * CD * itemsize + R * CD * 4 + B * CD * itemsize,
    )

    out = pl.pallas_call(
        _digitcaps2_kernel,
        out_shape=jax.ShapeDtypeStruct((B, CD), u_hat.dtype),
        grid=(n_tiles,),
        in_specs=[
            pl.BlockSpec((tile_b, R, CD), lambda i: (i, 0, 0)),  # u_hat batch tile
            pl.BlockSpec((R, CD), lambda i: (0, 0)),             # routing coeffs (resident)
        ],
        out_specs=pl.BlockSpec((tile_b, CD), lambda i: (i, 0)),
        compiler_params=pltpu.CompilerParams(
            dimension_semantics=("parallel",),   # batch tiles shard across TCs on v7x
            vmem_limit_bytes=32 * 1024 * 1024,
        ),
        cost_estimate=cost,
    )(u2, w_cd)

    return out.reshape(B, C, D, 1)   # free view back to the torch output shape


if __name__ == "__main__":
    # Small shapes consistent with the module: num_capsules=10, pose dim 16,
    # num_routes reduced from 32*6*6 to 8*6*6 for a quick demo.
    num_capsules = 10
    D = 16
    num_routes = 8 * 6 * 6     # 288

    # Module init: b_ij = ones(1, num_routes, num_capsules, 1) / 1152
    b_ij = jnp.ones((1, num_routes, num_capsules, 1), jnp.float32) / 1152.0

    fwd = jax.jit(digitcaps2_forward)

    def reference(u_hat):
        B = u_hat.shape[0]
        c_ij = jnp.broadcast_to(b_ij, (B,) + b_ij.shape[1:])[..., None]  # (B,R,C,1,1)
        return jnp.sum(c_ij * u_hat, axis=1)                             # (B,C,D,1)

    # B=2 exercises the tiny single-block path; B=12 exercises the multi-step
    # pipelined path with a ragged (masked) last batch tile and no padding copy.
    for i, B in enumerate((2, 12)):
        u_hat = jax.random.normal(
            jax.random.PRNGKey(i), (B, num_routes, num_capsules, D, 1), jnp.float32)
        s_j = jax.block_until_ready(fwd(u_hat, b_ij))
        ref = reference(u_hat)
        assert s_j.shape == (B, num_capsules, D, 1), s_j.shape
        assert jnp.allclose(s_j, ref, atol=1e-5, rtol=1e-4)
    print("KERNEL_OK")
</pallas_src>

<mosaic_0001>
module attributes {stable_mosaic.version = 11 : i64} {
  func.func @_digitcaps2_kernel(%arg0: i32, %arg1: memref<2x288x160xf32, #tpu.memory_space<vmem>>, %arg2: memref<288x160xf32, #tpu.memory_space<vmem>>, %arg3: memref<2x160xf32, #tpu.memory_space<vmem>>) attributes {dimension_semantics = [#tpu.dimension_semantics<parallel>], iteration_bounds = array<i64: 1>, scalar_prefetch = 0 : i64, scratch_operands = 0 : i64, tpu.core_type = #tpu.core_type<tc>, window_params = [{transform_indices = @transform_0, window_bounds = array<i64: 2, 288, 160>}, {pipeline_mode = #tpu.pipeline_mode<synchronous>, transform_indices = @transform_1, window_bounds = array<i64: 288, 160>}, {transform_indices = @transform_2, window_bounds = array<i64: 2, 160>}]} {
    %c0 = arith.constant 0 : index
    %c0_0 = arith.constant 0 : index
    %c0_1 = arith.constant 0 : index
    %0 = vector.load %arg1[%c0, %c0_0, %c0_1] : memref<2x288x160xf32, #tpu.memory_space<vmem>>, vector<2x288x160xf32>
    %c0_2 = arith.constant 0 : index
    %c0_3 = arith.constant 0 : index
    %1 = vector.load %arg2[%c0_2, %c0_3] : memref<288x160xf32, #tpu.memory_space<vmem>>, vector<288x160xf32>
    %2 = vector.shape_cast %1 : vector<288x160xf32> to vector<1x288x160xf32>
    %3 = vector.broadcast %2 : vector<1x288x160xf32> to vector<2x288x160xf32>
    %4 = arith.mulf %0, %3 : vector<2x288x160xf32>
    %cst = arith.constant dense<0.000000e+00> : vector<2x160xf32>
    %5 = vector.multi_reduction <add>, %4, %cst [1] : vector<2x288x160xf32> to vector<2x160xf32>
    %c0_4 = arith.constant 0 : index
    %c0_5 = arith.constant 0 : index
    %6 = vector.load %arg3[%c0_4, %c0_5] : memref<2x160xf32, #tpu.memory_space<vmem>>, vector<2x160xf32>
    tpu.vector_store %arg3[%c0_4, %c0_5], %5 {strides = array<i32>} : memref<2x160xf32, #tpu.memory_space<vmem>>, vector<2x160xf32>,
    return
  }
  func.func @transform_0(%arg0: i32) -> (i32, i32, i32) {
    %c0_i32 = arith.constant 0 : i32
    %c0_i32_0 = arith.constant 0 : i32
    %c0_i32_1 = arith.constant 0 : i32
    return %arg0, %c0_i32, %c0_i32_0 : i32, i32, i32
  }
  func.func @transform_1(%arg0: i32) -> (i32, i32) {
    %c0_i32 = arith.constant 0 : i32
    %c0_i32_0 = arith.constant 0 : i32
    %c0_i32_1 = arith.constant 0 : i32
    return %c0_i32, %c0_i32_0 : i32, i32
  }
  func.func @transform_2(%arg0: i32) -> (i32, i32) {
    %c0_i32 = arith.constant 0 : i32
    %c0_i32_0 = arith.constant 0 : i32
    return %arg0, %c0_i32 : i32, i32
  }
}

</mosaic_0001>

<bundles_post_ra>
// kernel: digitcaps2_forward.1
= control target key start
LH: loop header
LB: loop body
LE: loop exit
PB: predicated region body
PF: predicated region fallthrough
CT: control target
= control target key end

     0   :  { %vm412_vm0 = vcmask 261120   ;;  %vm614_vm1 = vcmask 1041408   ;;  %vm622_vm2 = vcmask 1041409   ;;  %vm624_vm3 = vcmask 1043459   ;;  %s2019_s0 = inlined_call_operand.vmem [shape: f32[2,288,160], index: 0, kind: input, shape index: {}]   ;;  %s2020_s1 = inlined_call_operand.vmem [shape: f32[288,160], index: 1, kind: input, shape index: {}]   ;;  %s2021_s2 = inlined_call_operand.vmem [shape: f32[2,160], index: 2, kind: output, shape index: {}]  }
   0x1   :  { %v11_v0 = vld [vmem:[%s2019_s0] sm:$0xff]  ;;  %v12_v1 = vld [vmem:[%s2019_s0 + $0x8] sm:$0xff]  ;;  %v13_v2 = vld [vmem:[%s2019_s0 + $0x10] sm:$0xff]  ;;  %vm631_vm4 = vcmask 257026   ;;  %vm626_vm5 = vcmask 1045509   ;;  %vm628_vm6 = vcmask 1047559  }
   0x2   :  { %v14_v3 = vld [vmem:[%s2019_s0 + $0x18] sm:$0xff]  ;;  %v15_v4 = vld [vmem:[%s2019_s0 + $0x20] sm:$0xff]  ;;  %v16_v5 = vld [vmem:[%s2019_s0 + $0x28] sm:$0xff] }
   0x3   :  { %v17_v6 = vld [vmem:[%s2019_s0 + $0x30] sm:$0xff]  ;;  %v83_v7 = vld [vmem:[%s2019_s0 + $0x240] sm:$0xff]  ;;  %v18_v8 = vld [vmem:[%s2019_s0 + $0x38] sm:$0xff] }
   0x4   :  { %v19_v9 = vld [vmem:[%s2019_s0 + $0x40] sm:$0xff]  ;;  %v20_v10 = vld [vmem:[%s2019_s0 + $0x48] sm:$0xff]  ;;  %v85_v12 = vld [vmem:[%s2019_s0 + $0x250] sm:$0xff] }
   0x5   :  { %v84_v11 = vld [vmem:[%s2019_s0 + $0x248] sm:$0xff]  ;;  %v155_v13 = vld [vmem:[%s2020_s1] sm:$0xff]  ;;  %v21_v14 = vld [vmem:[%s2019_s0 + $0x50] sm:$0xff] }
   0x6   :  { %v22_v15 = vld [vmem:[%s2019_s0 + $0x58] sm:$0xff]  ;;  %v23_v16 = vld [vmem:[%s2019_s0 + $0x60] sm:$0xff]  ;;  %v156_v18 = vld [vmem:[%s2020_s1 + $0x8] sm:$0xff]  ;;  %v736_v27 = vmul.f32 %v155_v13, %v11_v0  ;;  %v771_v38 = vmul.f32 %v155_v13, %v83_v7 }
   0x7   :  { %v86_v17 = vld [vmem:[%s2019_s0 + $0x258] sm:$0xff]  ;;  %v157_v19 = vld [vmem:[%s2020_s1 + $0x10] sm:$0xff]  ;;  %v24_v20 = vld [vmem:[%s2019_s0 + $0x68] sm:$0xff]  ;;  %v765_v35 = vmul.f32 %v156_v18, %v12_v1  ;;  %v808_v49 = vmul.f32 %v156_v18, %v84_v11 }
   0x8   :  { %v25_v21 = vld [vmem:[%s2019_s0 + $0x70] sm:$0xff]  ;;  %v26_v22 = vld [vmem:[%s2019_s0 + $0x78] sm:$0xff]  ;;  %v87_v23 = vld [vmem:[%s2019_s0 + $0x260] sm:$0xff]  ;;  %v767_v36 = vmul.f32 %v157_v19, %v13_v2  ;;  %2056 = vst [vmem:[#allocation2_spill] sm:$0xff] %v771_v38  ;;  %v846_v60 = vmul.f32 %v157_v19, %v85_v12 }
   0x9   :  { %v158_v24 = vld [vmem:[%s2020_s1 + $0x18] sm:$0xff]  ;;  %v159_v25 = vld [vmem:[%s2020_s1 + $0x20] sm:$0xff]  ;;  %v734_v26 = vld [vmem:[%s2020_s1 + $0x28] sm:$0xff]  ;;  %2057 = vst [vmem:[#allocation3_spill] sm:$0xff] %v808_v49 }
   0xa   :  { %v27_v28 = vld [vmem:[%s2019_s0 + $0x80] sm:$0xff]  ;;  %v28_v29 = vld [vmem:[%s2019_s0 + $0x88] sm:$0xff]  ;;  %v753_v32 = vld [vmem:[%s2020_s1 + $0x30] sm:$0xff]  ;;  %v769_v37 = vmul.f32 %v158_v24, %v14_v3  ;;  %v800_v46 = vmul.f32 %v159_v25, %v15_v4  ;;  %v803_v47 = vmul.f32 %v734_v26, %v16_v5  ;;  %2060 = vst [vmem:[#allocation6_spill] sm:$0xff] %v846_v60  ;;  %v884_v7 = vmul.f32 %v158_v24, %v86_v17 }
   0xb   :  { %v75_v30 = vld [vmem:[%s2019_s0 + $0x200] sm:$0xff]  ;;  %v88_v31 = vld [vmem:[%s2019_s0 + $0x268] sm:$0xff]  ;;  %v758_v33 = vld [vmem:[%s2020_s1 + $0x38] sm:$0xff]  ;;  %v806_v48 = vmul.f32 %v753_v32, %v17_v6  ;;  %v922_v18 = vmul.f32 %v159_v25, %v87_v23 }
   0xc   :  { %v763_v34 = vld [vmem:[%s2020_s1 + $0x40] sm:$0xff]  ;;  %v29_v39 = vld [vmem:[%s2019_s0 + $0x90] sm:$0xff]  ;;  %v78_v41 = vld [vmem:[%s2019_s0 + $0x218] sm:$0xff]  ;;  %v838_v57 = vmul.f32 %v758_v33, %v18_v8  ;;  %2064 = vst [vmem:[#allocation10_spill] sm:$0xff] %v884_v7 }
   0xd   :  { %v77_v40 = vld [vmem:[%s2019_s0 + $0x210] sm:$0xff]  ;;  %v79_v42 = vld [vmem:[%s2019_s0 + $0x220] sm:$0xff]  ;;  %v788_v43 = vld [vmem:[%s2020_s1 + $0x48] sm:$0xff]  ;;  %v841_v58 = vmul.f32 %v763_v34, %v19_v9  ;;  %2069 = vst [vmem:[#allocation15_spill] sm:$0xff] %v922_v18  ;;  %v961_v18 = vmul.f32 %v734_v26, %v88_v31 }
   0xe   :  { %v793_v44 = vld [vmem:[%s2020_s1 + $0x50] sm:$0xff]  ;;  %v798_v45 = vld [vmem:[%s2020_s1 + $0x58] sm:$0xff]  ;;  %v80_v51 = vld [vmem:[%s2019_s0 + $0x228] sm:$0xff]  ;;  %v844_v59 = vmul.f32 %v788_v43, %v20_v10 }
   0xf   :  { %v30_v50 = vld [vmem:[%s2019_s0 + $0x98] sm:$0xff]  ;;  %v81_v52 = vld [vmem:[%s2019_s0 + $0x230] sm:$0xff]  ;;  %v825_v54 = vld [vmem:[%s2020_s1 + $0x60] sm:$0xff]  ;;  %2058 = vst [vmem:[#allocation4_spill] sm:$0xff] %v841_v58  ;;  %v876_v4 = vmul.f32 %v793_v44, %v21_v14  ;;  %v879_v5 = vmul.f32 %v798_v45, %v22_v15 }
  0x10   :  { %v82_v53 = vld [vmem:[%s2019_s0 + $0x238] sm:$0xff]  ;;  %v830_v55 = vld [vmem:[%s2020_s1 + $0x68] sm:$0xff]  ;;  %v835_v56 = vld [vmem:[%s2020_s1 + $0x70] sm:$0xff]  ;;  %2059 = vst [vmem:[#allocation5_spill] sm:$0xff] %v844_v59  ;;  %v882_v6 = vmul.f32 %v825_v54, %v23_v16 }
  0x11   :  { %v31_v61 = vld [vmem:[%s2019_s0 + $0xa0] sm:$0xff]  ;;  %v32_v62 = vld [vmem:[%s2019_s0 + $0xa8] sm:$0xff]  ;;  %v33_v63 = vld [vmem:[%s2019_s0 + $0xb0] sm:$0xff]  ;;  %2061 = vst [vmem:[#allocation7_spill] sm:$0xff] %v876_v4  ;;  %v914_v15 = vmul.f32 %v830_v55, %v24_v20  ;;  %v917_v16 = vmul.f32 %v835_v56, %v25_v21 }
  0x12   :  { %v89_v0 = vld [vmem:[%s2019_s0 + $0x270] sm:$0xff]  ;;  %v863_v1 = vld [vmem:[%s2020_s1 + $0x78] sm:$0xff]  ;;  %v868_v2 = vld [vmem:[%s2020_s1 + $0x80] sm:$0xff]  ;;  %2062 = vst [vmem:[#allocation8_spill] sm:$0xff] %v879_v5 }
  0x13   :  { %v873_v3 = vld [vmem:[%s2020_s1 + $0x88] sm:$0xff]  ;;  %2063 = vst [vmem:[#allocation9_spill] sm:$0xff] %v882_v6  ;;  %v34_v8 = vld [vmem:[%s2019_s0 + $0xb8] sm:$0xff]  ;;  %v35_v9 = vld [vmem:[%s2019_s0 + $0xc0] sm:$0xff]  ;;  %v920_v17 = vmul.f32 %v863_v1, %v26_v22  ;;  %v1094_v58 = vmul.f32 %v753_v32, %v89_v0 }
  0x14   :  { %v36_v10 = vld [vmem:[%s2019_s0 + $0xc8] sm:$0xff]  ;;  %v90_v11 = vld [vmem:[%s2019_s0 + $0x278] sm:$0xff]  ;;  %v901_v12 = vld [vmem:[%s2020_s1 + $0x90] sm:$0xff]  ;;  %2066 = vst [vmem:[#allocation12_spill] sm:$0xff] %v914_v15 }
  0x15   :  { %v906_v13 = vld [vmem:[%s2020_s1 + $0x98] sm:$0xff]  ;;  %v911_v14 = vld [vmem:[%s2020_s1 + $0x200] sm:$0xff]  ;;  %2067 = vst [vmem:[#allocation13_spill] sm:$0xff] %v917_v16  ;;  %v37_v19 = vld [vmem:[%s2019_s0 + $0xd0] sm:$0xff]  ;;  %v952_v16 = vmul.f32 %v868_v2, %v27_v28 }
  0x16   :  { %2065 = vst [vmem:[#allocation11_spill] sm:$0xff] %v906_v13  ;;  %v38_v24 = vld [vmem:[%s2019_s0 + $0xd8] sm:$0xff]  ;;  %v39_v20 = vld [vmem:[%s2019_s0 + $0xe0] sm:$0xff]  ;;  %v939_v22 = vld [vmem:[%s2020_s1 + $0x210] sm:$0xff]  ;;  %v958_v6 = vmul.f32 %v911_v14, %v75_v30 }
  0x17   :  { %2068 = vst [vmem:[#allocation14_spill] sm:$0xff] %v920_v17  ;;  %v91_v21 = vld [vmem:[%s2019_s0 + $0x280] sm:$0xff]  ;;  %v944_v23 = vld [vmem:[%s2020_s1 + $0x218] sm:$0xff]  ;;  %v955_v17 = vmul.f32 %v873_v3, %v28_v29  ;;  %v40_v15 = vld [vmem:[%s2019_s0 + $0xe8] sm:$0xff] }
  0x18   :  { %v949_v25 = vld [vmem:[%s2020_s1 + $0x220] sm:$0xff]  ;;  %2070 = vst [vmem:[#allocation16_spill] sm:$0xff] %v952_v16  ;;  %v41_v4 = vld [vmem:[%s2019_s0 + $0xf0] sm:$0xff]  ;;  %v42_v28 = vld [vmem:[%s2019_s0 + $0xf8] sm:$0xff]  ;;  %v994_v16 = vmul.f32 %v939_v22, %v77_v40 }
  0x19   :  { %2071 = vst [vmem:[#allocation17_spill] sm:$0xff] %v955_v17  ;;  %v92_v29 = vld [vmem:[%s2019_s0 + $0x288] sm:$0xff]  ;;  %v983_v30 = vld [vmem:[%s2020_s1 + $0x230] sm:$0xff]  ;;  %v988_v31 = vld [vmem:[%s2020_s1 + $0x238] sm:$0xff]  ;;  %v997_v17 = vmul.f32 %v944_v23, %v78_v41 }
  0x1a   :  { %2072 = vst [vmem:[#allocation18_spill] sm:$0xff] %v958_v6  ;;  %v978_v26 = vld [vmem:[%s2020_s1 + $0x228] sm:$0xff]  ;;  %v991_v6 = vmul.f32 %v901_v12, %v29_v39  ;;  %v1005_v7 = vld [vmem:[%s2019_s0 + $0x100] sm:$0xff]  ;;  %v1015_v39 = vld [vmem:[%s2019_s0 + $0x110] sm:$0xff]  ;;  %v1047_v60 = vmul.f32 %v988_v31, %v82_v53 }
  0x1b   :  { %2073 = vst [vmem:[#allocation19_spill] sm:$0xff] %v961_v18  ;;  %v1000_v18 = vmul.f32 %v949_v25, %v79_v42  ;;  %v1010_v49 = vld [vmem:[%s2019_s0 + $0x108] sm:$0xff]  ;;  %v1020_v40 = vld [vmem:[%s2019_s0 + $0x290] sm:$0xff]  ;;  %v1025_v41 = vld [vmem:[%s2020_s1 + $0xa0] sm:$0xff] }
  0x1c   :  { %2074 = vst [vmem:[#allocation20_spill] sm:$0xff] %v991_v6  ;;  %v1030_v42 = vld [vmem:[%s2020_s1 + $0xa8] sm:$0xff]  ;;  %v1044_v6 = vmul.f32 %v983_v30, %v81_v52  ;;  %v1052_v38 = vld [vmem:[%s2019_s0 + $0x118] sm:$0xff]  ;;  %v1057_v5 = vld [vmem:[%s2019_s0 + $0x120] sm:$0xff] }
  0x1d   :  { %2075 = vst [vmem:[#allocation21_spill] sm:$0xff] %v994_v16  ;;  %v1038_v16 = vmul.f32 %v906_v13, %v30_v50  ;;  %v1062_v50 = vld [vmem:[%s2019_s0 + $0x128] sm:$0xff]  ;;  %v1072_v52 = vld [vmem:[%s2020_s1 + $0xb8] sm:$0xff]  ;;  %v1077_v53 = vld [vmem:[%s2020_s1 + $0xc0] sm:$0xff] }
  0x1e   :  { %2076 = vst [vmem:[#allocation22_spill] sm:$0xff] %v997_v17  ;;  %v1041_v17 = vmul.f32 %v978_v26, %v80_v51  ;;  %v1067_v51 = vld [vmem:[%s2019_s0 + $0x298] sm:$0xff]  ;;  %v1099_v13 = vld [vmem:[%s2019_s0 + $0x130] sm:$0xff]  ;;  %v1114_v32 = vld [vmem:[%s2019_s0 + $0x2a0] sm:$0xff] }
  0x1f   :  { %2077 = vst [vmem:[#allocation23_spill] sm:$0xff] %v1000_v18  ;;  %v1035_v18 = vld [vmem:[%s2020_s1 + $0xb0] sm:$0xff]  ;;  %v1104_v59 = vld [vmem:[%s2019_s0 + $0x138] sm:$0xff]  ;;  %v1129_v0 = vld [vmem:[%s2020_s1 + $0xe0] sm:$0xff] }
  0x20   :  { %2078 = vst [vmem:[#allocation24_spill] sm:$0xff] %v1030_v42  ;;  %vm632_vm7 = vmor %vm631_vm4, %vm614_vm1 }
  0x21   :  { %2079 = vst [vmem:[#allocation25_spill] sm:$0xff] %v1035_v18 }
  0x22   :  { %2080 = vst [vmem:[#allocation26_spill] sm:$0xff] %v1038_v16  ;;  %v1091_v16 = vmul.f32 %v1035_v18, %v33_v63  ;;  %v1124_v63 = vld [vmem:[%s2020_s1 + $0xd8] sm:$0xff]  ;;  %v1141_v18 = vmul.f32 %v758_v33, %v90_v11  ;;  %v1158_v33 = vld [vmem:[%s2020_s1 + $0xe8] sm:$0xff] }
  0x23   :  { %2081 = vst [vmem:[#allocation27_spill] sm:$0xff] %v1041_v17  ;;  %v1088_v17 = vmul.f32 %v1030_v42, %v32_v62  ;;  %v1119_v62 = vld [vmem:[%s2020_s1 + $0xd0] sm:$0xff]  ;;  %v52_v42 = vld [vmem:[%s2019_s0 + $0x148] sm:$0xff]  ;;  %v1168_v11 = vld [vmem:[%s2020_s1 + $0xf8] sm:$0xff] }
  0x24   :  { %2082 = vst [vmem:[#allocation28_spill] sm:$0xff] %v1044_v6  ;;  %v1082_v6 = vld [vmem:[%s2020_s1 + $0xc8] sm:$0xff] }
  0x25   :  { %2083 = vst [vmem:[#allocation29_spill] sm:$0xff] %v1047_v60  ;;  %v1085_v60 = vmul.f32 %v1025_v41, %v31_v61  ;;  %v1109_v61 = vld [vmem:[%s2019_s0 + $0x140] sm:$0xff] }
  0x26   :  { %2084 = vst [vmem:[#allocation30_spill] sm:$0xff] %v1072_v52 }
  0x27   :  { %2085 = vst [vmem:[#allocation31_spill] sm:$0xff] %v1077_v53 }
  0x28   :  { %2086 = vst [vmem:[#allocation32_spill] sm:$0xff] %v1082_v6 }
  0x29   :  { %2087 = vst [vmem:[#allocation33_spill] sm:$0xff] %v1085_v60  ;;  %v1135_v60 = vmul.f32 %v1077_v53, %v35_v9  ;;  %v96_v9 = vld [vmem:[%s2019_s0 + $0x2a8] sm:$0xff]  ;;  %v55_v53 = vld [vmem:[%s2019_s0 + $0x160] sm:$0xff] }
  0x2a   :  { %2088 = vst [vmem:[#allocation34_spill] sm:$0xff] %v1088_v17  ;;  %v1138_v17 = vmul.f32 %v1082_v6, %v36_v10  ;;  %v1163_v10 = vld [vmem:[%s2020_s1 + $0xf0] sm:$0xff]  ;;  %v1180_v6 = vmul.f32 %v763_v34, %v91_v21  ;;  %v1197_v34 = vld [vmem:[%s2020_s1 + $0x100] sm:$0xff] }
  0x2b   :  { %2089 = vst [vmem:[#allocation35_spill] sm:$0xff] %v1091_v16  ;;  %v1132_v16 = vmul.f32 %v1072_v52, %v34_v8  ;;  %v54_v8 = vld [vmem:[%s2019_s0 + $0x158] sm:$0xff]  ;;  %v56_v52 = vld [vmem:[%s2019_s0 + $0x168] sm:$0xff]  ;;  %v1207_v21 = vld [vmem:[%s2020_s1 + $0x110] sm:$0xff] }
  0x2c   :  { %2090 = vst [vmem:[#allocation36_spill] sm:$0xff] %v1094_v58  ;;  %v53_v58 = vld [vmem:[%s2019_s0 + $0x150] sm:$0xff] }
  0x2d   :  { %2091 = vst [vmem:[#allocation37_spill] sm:$0xff] %v1119_v62 }
  0x2e   :  { %2092 = vst [vmem:[#allocation38_spill] sm:$0xff] %v1124_v63 }
  0x2f   :  { %2093 = vst [vmem:[#allocation39_spill] sm:$0xff] %v1129_v0 }
  0x30   :  { %2094 = vst [vmem:[#allocation40_spill] sm:$0xff] %v1132_v16  ;;  %v1177_v16 = vmul.f32 %v1129_v0, %v39_v20  ;;  %v1202_v20 = vld [vmem:[%s2020_s1 + $0x108] sm:$0xff]  ;;  %v1219_v0 = vmul.f32 %v788_v43, %v92_v29  ;;  %v1236_v43 = vld [vmem:[%s2020_s1 + $0x118] sm:$0xff] }
  0x31   :  { %2095 = vst [vmem:[#allocation41_spill] sm:$0xff] %v1135_v60  ;;  %v1171_v60 = vmul.f32 %v1119_v62, %v37_v19  ;;  %v57_v19 = vld [vmem:[%s2019_s0 + $0x170] sm:$0xff]  ;;  %v59_v62 = vld [vmem:[%s2019_s0 + $0x180] sm:$0xff]  ;;  %v1246_v29 = vld [vmem:[%s2020_s1 + $0x128] sm:$0xff] }
  0x32   :  { %2096 = vst [vmem:[#allocation42_spill] sm:$0xff] %v1138_v17  ;;  %v1174_v17 = vmul.f32 %v1124_v63, %v38_v24  ;;  %v97_v24 = vld [vmem:[%s2019_s0 + $0x2b0] sm:$0xff]  ;;  %v58_v63 = vld [vmem:[%s2019_s0 + $0x178] sm:$0xff] }
  0x33   :  { %2097 = vst [vmem:[#allocation43_spill] sm:$0xff] %v1163_v10 }
  0x34   :  { %2098 = vst [vmem:[#allocation44_spill] sm:$0xff] %v1168_v11 }
  0x35   :  { %2099 = vst [vmem:[#allocation45_spill] sm:$0xff] %v1171_v60  ;;  %v1213_v60 = vmul.f32 %v1163_v10, %v41_v4  ;;  %v60_v4 = vld [vmem:[%s2019_s0 + $0x188] sm:$0xff]  ;;  %v61_v10 = vld [vmem:[%s2019_s0 + $0x190] sm:$0xff] }
  0x36   :  { %2100 = vst [vmem:[#allocation46_spill] sm:$0xff] %v1174_v17  ;;  %v1216_v17 = vmul.f32 %v1168_v11, %v42_v28  ;;  %v1241_v28 = vld [vmem:[%s2020_s1 + $0x120] sm:$0xff]  ;;  %v1262_v11 = vmul.f32 %v793_v44, %v1020_v40  ;;  %v1279_v44 = vld [vmem:[%s2020_s1 + $0x130] sm:$0xff]  ;;  %v1284_v40 = vld [vmem:[%s2020_s1 + $0x138] sm:$0xff] }
  0x37   :  { %2101 = vst [vmem:[#allocation47_spill] sm:$0xff] %v1177_v16  ;;  %v1210_v16 = vmul.f32 %v1158_v33, %v40_v15  ;;  %v98_v15 = vld [vmem:[%s2019_s0 + $0x2b8] sm:$0xff] }
  0x38   :  { %2102 = vst [vmem:[#allocation48_spill] sm:$0xff] %v1197_v34 }
  0x39   :  { %2103 = vst [vmem:[#allocation49_spill] sm:$0xff] %v1202_v20 }
  0x3a   :  { %2104 = vst [vmem:[#allocation50_spill] sm:$0xff] %v1207_v21 }
  0x3b   :  { %2105 = vst [vmem:[#allocation51_spill] sm:$0xff] %v1210_v16  ;;  %v1258_v16 = vmul.f32 %v1207_v21, %v1015_v39  ;;  %v150_v39 = vld [vmem:[%s2019_s0 + $0x458] sm:$0xff]  ;;  %v1301_v21 = vmul.f32 %v1246_v29, %v1062_v50 }
  0x3c   :  { %2106 = vst [vmem:[#allocation52_spill] sm:$0xff] %v1213_v60  ;;  %v1250_v60 = vmul.f32 %v1197_v34, %v1005_v7  ;;  %v147_v7 = vld [vmem:[%s2019_s0 + $0x440] sm:$0xff]  ;;  %v154_v50 = vld [vmem:[%s2019_s0 + $0x478] sm:$0xff] }
  0x3d   :  { %2107 = vst [vmem:[#allocation53_spill] sm:$0xff] %v1216_v17  ;;  %v1254_v17 = vmul.f32 %v1202_v20, %v1010_v49  ;;  %v149_v49 = vld [vmem:[%s2019_s0 + $0x450] sm:$0xff]  ;;  %v1305_v20 = vmul.f32 %v798_v45, %v1067_v51  ;;  %v151_v34 = vld [vmem:[%s2019_s0 + $0x460] sm:$0xff]  ;;  %v1322_v45 = vld [vmem:[%s2020_s1 + $0x148] sm:$0xff] }
  0x3e   :  { %2108 = vst [vmem:[#allocation54_spill] sm:$0xff] %v1236_v43  ;;  %v1327_v51 = vld [vmem:[%s2020_s1 + $0x150] sm:$0xff] }
  0x3f   :  { %2109 = vst [vmem:[#allocation55_spill] sm:$0xff] %v1241_v28 }
  0x40   :  { %2110 = vst [vmem:[#allocation56_spill] sm:$0xff] %v1246_v29 }
  0x41   :  { %2111 = vst [vmem:[#allocation57_spill] sm:$0xff] %v1250_v60  ;;  %v1293_v60 = vmul.f32 %v1236_v43, %v1052_v38  ;;  %v152_v38 = vld [vmem:[%s2019_s0 + $0x468] sm:$0xff]  ;;  %v1353_v43 = vld [vmem:[%s2020_s1 + $0x160] sm:$0xff] }
  0x42   :  { %2112 = vst [vmem:[#allocation58_spill] sm:$0xff] %v1254_v17  ;;  %v1297_v17 = vmul.f32 %v1241_v28, %v1057_v5  ;;  %v153_v5 = vld [vmem:[%s2019_s0 + $0x470] sm:$0xff]  ;;  %v1348_v28 = vmul.f32 %v825_v54, %v1114_v32  ;;  %v1369_v54 = vmul.f32 %v1327_v51, %v53_v58  ;;  %v1388_v58 = vld [vmem:[%s2020_s1 + $0x180] sm:$0xff] }
  0x43   :  { %2113 = vst [vmem:[#allocation59_spill] sm:$0xff] %v1258_v16  ;;  %v1289_v16 = vld [vmem:[%s2020_s1 + $0x140] sm:$0xff] }
  0x44   :  { %2114 = vst [vmem:[#allocation60_spill] sm:$0xff] %v1289_v16  ;;  %v1344_v29 = vmul.f32 %v1289_v16, %v1109_v61  ;;  %v1366_v61 = vmul.f32 %v1322_v45, %v52_v42  ;;  %v1383_v16 = vld [vmem:[%s2020_s1 + $0x178] sm:$0xff]  ;;  %v1393_v42 = vld [vmem:[%s2020_s1 + $0x188] sm:$0xff] }
  0x45   :  { %2115 = vst [vmem:[#allocation61_spill] sm:$0xff] %v1293_v60  ;;  %v1340_v60 = vmul.f32 %v1284_v40, %v1104_v59  ;;  %v1363_v59 = vld [vmem:[%s2020_s1 + $0x170] sm:$0xff] }
  0x46   :  { %2116 = vst [vmem:[#allocation62_spill] sm:$0xff] %v1297_v17  ;;  %v1332_v17 = vld [vmem:[%s2020_s1 + $0x158] sm:$0xff] }
  0x47   :  { %2117 = vst [vmem:[#allocation63_spill] sm:$0xff] %v1301_v21  ;;  %v1336_v21 = vmul.f32 %v1279_v44, %v1099_v13  ;;  %v1358_v13 = vld [vmem:[%s2020_s1 + $0x168] sm:$0xff]  ;;  %v1372_v32 = vmul.f32 %v1332_v17, %v54_v8 }
  0x48   :  { %2118 = vst [vmem:[#allocation64_spill] sm:$0xff] %v1332_v17  ;;  %v1399_v8 = vmul.f32 %v1358_v13, %v56_v52  ;;  %v63_v17 = vld [vmem:[%s2019_s0 + $0x1a0] sm:$0xff]  ;;  %v1419_v52 = vmul.f32 %v1383_v16, %v58_v63 }
  0x49   :  { %2119 = vst [vmem:[#allocation65_spill] sm:$0xff] %v1336_v21  ;;  %v62_v21 = vld [vmem:[%s2019_s0 + $0x198] sm:$0xff]  ;;  %v99_v63 = vld [vmem:[%s2019_s0 + $0x2c0] sm:$0xff] }
  0x4a   :  { %2120 = vst [vmem:[#allocation66_spill] sm:$0xff] %v1344_v29  ;;  %v1375_v29 = vmul.f32 %v830_v55, %v96_v9  ;;  %v1396_v55 = vmul.f32 %v1353_v43, %v55_v53  ;;  %v1402_v9 = vmul.f32 %v1363_v59, %v57_v19  ;;  %v1416_v53 = vld [vmem:[%s2020_s1 + $0x190] sm:$0xff]  ;;  %v1422_v19 = vmul.f32 %v1388_v58, %v59_v62 }
  0x4b   :  { %2121 = vst [vmem:[#allocation67_spill] sm:$0xff] %v1363_v59  ;;  %v65_v59 = vld [vmem:[%s2019_s0 + $0x1b0] sm:$0xff]  ;;  %v1440_v62 = vmul.f32 %v1416_v53, %v61_v10  ;;  %v100_v10 = vld [vmem:[%s2019_s0 + $0x2c8] sm:$0xff] }
  0x4c   :  { %2122 = vst [vmem:[#allocation68_spill] sm:$0xff] %v1369_v54  ;;  %v1405_v54 = vmul.f32 %v835_v56, %v97_v24  ;;  %v1425_v56 = vmul.f32 %v1393_v42, %v60_v4  ;;  %v1428_v24 = vmul.f32 %v863_v1, %v98_v15  ;;  %v1443_v4 = vmul.f32 %v911_v14, %v147_v7 }
  0x4d   :  { %2123 = vst [vmem:[#allocation69_spill] sm:$0xff] %v1372_v32  ;;  %v64_v32 = vld [vmem:[%s2019_s0 + $0x1a8] sm:$0xff]  ;;  %v1446_v1 = vmul.f32 %v939_v22, %v149_v49  ;;  %v1449_v15 = vmul.f32 %v944_v23, %v150_v39  ;;  %v1461_v14 = vmul.f32 %v949_v25, %v151_v34  ;;  %v1464_v22 = vmul.f32 %v978_v26, %v152_v38  ;;  %v69_v49 = vld [vmem:[%s2019_s0 + $0x1d0] sm:$0xff]  ;;  %v70_v39 = vld [vmem:[%s2019_s0 + $0x1d8] sm:$0xff] }
  0x4e   :  { %2124 = vst [vmem:[#allocation70_spill] sm:$0xff] %v1388_v58  ;;  %v67_v58 = vld [vmem:[%s2019_s0 + $0x1c0] sm:$0xff]  ;;  %v1467_v23 = vmul.f32 %v983_v30, %v153_v5  ;;  %v1470_v7 = vmul.f32 %v988_v31, %v154_v50  ;;  %v1481_v25 = vld [vmem:[%s2020_s1 + $0x198] sm:$0xff]  ;;  %v371_v30 = vadd.f32 %v767_v36, %v736_v27  ;;  %v413_v31 = vsel %vm412_vm0, %v765_v35, 0.0  ;;  %v101_v5 = vld [vmem:[%s2019_s0 + $0x2d0] sm:$0xff] }
  0x4f   :  { %2125 = vst [vmem:[#allocation71_spill] sm:$0xff] %v1393_v42  ;;  %v68_v42 = vld [vmem:[%s2019_s0 + $0x1c8] sm:$0xff]  ;;  %v1486_v26 = vld [vmem:[%s2020_s1 + $0x1a0] sm:$0xff]  ;;  %v414_v34 = vsel %vm412_vm0, %v769_v37, 0.0  ;;  %v416_v38 = vsel %vm412_vm0, %v803_v47, 0.0  ;;  %v102_v50 = vld [vmem:[%s2019_s0 + $0x2d8] sm:$0xff]  ;;  %v1508_v35 = vmul.f32 %v1481_v25, %v62_v21  ;;  %v1514_v37 = vmul.f32 %v868_v2, %v99_v63 }
  0x50   :  { %2126 = vst [vmem:[#allocation72_spill] sm:$0xff] %v1402_v9  ;;  %v66_v9 = vld [vmem:[%s2019_s0 + $0x1b8] sm:$0xff]  ;;  %v1505_v27 = vld [vmem:[%s2020_s1 + $0x1a8] sm:$0xff]  ;;  %v1511_v36 = vmul.f32 %v1486_v26, %v63_v17  ;;  %v415_v47 = vadd.f32 %v414_v34, %v413_v31  ;;  %v1529_v21 = vld [vmem:[%s2020_s1 + $0x1c0] sm:$0xff]  ;;  %v1535_v2 = vmul.f32 %v873_v3, %v100_v10  ;;  %v372_v63 = vadd.f32 %v371_v30, %v800_v46 }
  0x51   :  { %2127 = vst [vmem:[#allocation73_spill] sm:$0xff] %v1443_v4  ;;  %v1532_v17 = vmul.f32 %v1505_v27, %v64_v32  ;;  %v418_v31 = vsel %vm412_vm0, %v838_v57, 0.0  ;;  %v71_v34 = vld [vmem:[%s2019_s0 + $0x1e0] sm:$0xff]  ;;  %v1549_v32 = vld [vmem:[%s2020_s1 + $0x1c8] sm:$0xff]  ;;  %v1558_v57 = vmul.f32 %v1529_v21, %v67_v58  ;;  %v1563_v30 = vld [vmem:[%s2020_s1 + $0x1d0] sm:$0xff] }
  0x52   :  { %2128 = vst [vmem:[#allocation74_spill] sm:$0xff] %v1446_v1  ;;  %v72_v1 = vld [vmem:[%s2019_s0 + $0x1e8] sm:$0xff]  ;;  %v417_v10 = vadd.f32 %v416_v38, %v415_v47  ;;  %v1568_v4 = vld [vmem:[%s2020_s1 + $0x1d8] sm:$0xff]  ;;  %v373_v58 = vadd.f32 %v372_v63, %v806_v48  ;;  %v1582_v47 = vld [vmem:[%s2020_s1 + $0x1e0] sm:$0xff] }
  0x53   :  { %2129 = vst [vmem:[#allocation75_spill] sm:$0xff] %v1461_v14  ;;  %v1524_v14 = vld [vmem:[%s2020_s1 + $0x1b8] sm:$0xff]  ;;  %v2146_v48 = vld [vmem:[#allocation11_spill] sm:$0xff]  ;;  %v73_v63 = vld [vmem:[%s2019_s0 + $0x1f0] sm:$0xff] }
  0x54   :  { %2130 = vst [vmem:[#allocation76_spill] sm:$0xff] %v1467_v23  ;;  %v1519_v23 = vld [vmem:[%s2020_s1 + $0x1b0] sm:$0xff]  ;;  %v1555_v46 = vmul.f32 %v1524_v14, %v66_v9  ;;  %v1574_v9 = vmul.f32 %v901_v12, %v101_v5  ;;  %v1593_v12 = vmul.f32 %v1568_v4, %v70_v39  ;;  %v1596_v5 = vmul.f32 %v2146_v48, %v102_v50  ;;  %v103_v50 = vld [vmem:[%s2019_s0 + $0x2e0] sm:$0xff] }
  0x55   :  { %2131 = vst [vmem:[#allocation77_spill] sm:$0xff] %v1486_v26  ;;  %v1552_v3 = vmul.f32 %v1519_v23, %v65_v59  ;;  %v1571_v59 = vmul.f32 %v1549_v32, %v68_v42  ;;  %v1590_v42 = vmul.f32 %v1563_v30, %v69_v49  ;;  %v2152_v48 = vld [vmem:[#allocation6_spill] sm:$0xff] }
  0x56   :  { %2132 = vst [vmem:[#allocation78_spill] sm:$0xff] %v1519_v23 }
  0x57   :  { %2133 = vst [vmem:[#allocation79_spill] sm:$0xff] %v1524_v14  ;;  %v2149_v14 = vld [vmem:[#allocation4_spill] sm:$0xff] }
  0x58   :  { %2134 = vst [vmem:[#allocation80_spill] sm:$0xff] %v1529_v21  ;;  %v2141_v21 = vld [vmem:[#allocation5_spill] sm:$0xff]  ;;  %v374_v49 = vadd.f32 %v373_v58, %v2149_v14  ;;  %v2156_v58 = vld [vmem:[#allocation7_spill] sm:$0xff] }
  0x59   :  { %2135 = vst [vmem:[#allocation81_spill] sm:$0xff] %v1549_v32  ;;  %v420_v38 = vsel %vm412_vm0, %v2141_v21, 0.0  ;;  %v419_v21 = vadd.f32 %v418_v31, %v417_v10  ;;  %v1602_v32 = vmul.f32 %v1582_v47, %v71_v34  ;;  %v2151_v10 = vld [vmem:[#allocation2_spill] sm:$0xff]  ;;  %v74_v14 = vld [vmem:[%s2019_s0 + $0x1f8] sm:$0xff] }
  0x5a   :  { %2136 = vst [vmem:[#allocation82_spill] sm:$0xff] %v1552_v3 }
  0x5b   :  { %2137 = vst [vmem:[#allocation83_spill] sm:$0xff] %v1558_v57  ;;  %v1587_v57 = vld [vmem:[%s2020_s1 + $0x1e8] sm:$0xff]  ;;  %v421_v31 = vadd.f32 %v420_v38, %v419_v21  ;;  %v375_v38 = vadd.f32 %v374_v49, %v2156_v58  ;;  %v2157_v21 = vld [vmem:[#allocation12_spill] sm:$0xff]  ;;  %v536_v49 = vsel %vm412_vm0, %v1141_v18, 0.0 }
  0x5c   :  { %2138 = vst [vmem:[#allocation84_spill] sm:$0xff] %v1563_v30  ;;  %v1605_v23 = vmul.f32 %v1587_v57, %v72_v1  ;;  %v2150_v30 = vld [vmem:[#allocation8_spill] sm:$0xff] }
  0x5d   :  { %2139 = vst [vmem:[#allocation85_spill] sm:$0xff] %v1568_v4  ;;  %v422_v39 = vsel %vm412_vm0, %v2150_v30, 0.0  ;;  %v490_v4 = vadd.f32 %v2152_v48, %v2151_v10  ;;  %v1625_v30 = vld [vmem:[%s2020_s1 + $0x1f0] sm:$0xff]  ;;  %v424_v10 = vsel %vm412_vm0, %v2157_v21, 0.0 }
  0x5e   :  { %2140 = vst [vmem:[#allocation86_spill] sm:$0xff] %v1571_v59  ;;  %v105_v18 = vld [vmem:[%s2019_s0 + $0x2f0] sm:$0xff] }
  0x5f   :  { %2142 = vst [vmem:[#allocation5_spill] sm:$0xff] %v1582_v47  ;;  %v2154_v47 = vld [vmem:[#allocation10_spill] sm:$0xff] }
  0x60   :  { %2143 = vst [vmem:[#allocation87_spill] sm:$0xff] %v1587_v57  ;;  %v532_v1 = vsel %vm412_vm0, %v2154_v47, 0.0  ;;  %v2158_v57 = vld [vmem:[#allocation19_spill] sm:$0xff] }
  0x61   :  { %2144 = vst [vmem:[#allocation88_spill] sm:$0xff] %v1590_v42  ;;  %v2153_v42 = vld [vmem:[#allocation3_spill] sm:$0xff] }
  0x62   :  { %2145 = vst [vmem:[#allocation89_spill] sm:$0xff] %v1593_v12  ;;  %v531_v34 = vsel %vm412_vm0, %v2153_v42, 0.0  ;;  %v534_v42 = vsel %vm412_vm0, %v2158_v57, 0.0  ;;  %v76_v47 = vld [vmem:[%s2019_s0 + $0x208] sm:$0xff]  ;;  %v1647_v57 = vld [vmem:[%s2020_s1 + $0x1f8] sm:$0xff] }
  0x63   :  { %2147 = vst [vmem:[#allocation11_spill] sm:$0xff] %v1602_v32  ;;  %v533_v48 = vadd.f32 %v532_v1, %v531_v34  ;;  %v1636_v32 = vmul.f32 %v1625_v30, %v73_v63  ;;  %v2160_v12 = vld [vmem:[#allocation15_spill] sm:$0xff]  ;;  %v1650_v1 = vmul.f32 %v1025_v41, %v103_v50  ;;  %v2162_v63 = vld [vmem:[#allocation9_spill] sm:$0xff]  ;;  %v1664_v21 = vmul.f32 %v1647_v57, %v74_v14  ;;  %v2166_v50 = vld [vmem:[#allocation36_spill] sm:$0xff] }
  0x64   :  { %2148 = vst [vmem:[#allocation90_spill] sm:$0xff] %v1605_v23  ;;  %v423_v23 = vadd.f32 %v422_v39, %v421_v31  ;;  %v491_v59 = vadd.f32 %v490_v4, %v2160_v12  ;;  %v104_v34 = vld [vmem:[%s2019_s0 + $0x2e8] sm:$0xff]  ;;  %v376_v58 = vadd.f32 %v375_v38, %v2162_v63  ;;  %v2163_v39 = vld [vmem:[#allocation14_spill] sm:$0xff]  ;;  %v538_v38 = vsel %vm412_vm0, %v1219_v0, 0.0  ;;  %v2167_v63 = vld [vmem:[#allocation13_spill] sm:$0xff] }
  0x65   :  { %2155 = vst [vmem:[#allocation4_spill] sm:$0xff] %v1625_v30  ;;  %v426_v4 = vsel %vm412_vm0, %v2163_v39, 0.0  ;;  %v535_v12 = vadd.f32 %v534_v42, %v533_v48  ;;  %v1661_v31 = vld [vmem:[%s2020_s1 + $0x208] sm:$0xff]  ;;  %v106_v48 = vld [vmem:[%s2019_s0 + $0x2f8] sm:$0xff] }
  0x66   :  { %2159 = vst [vmem:[#allocation8_spill] sm:$0xff] %v1636_v32  ;;  %v425_v41 = vadd.f32 %v424_v10, %v423_v23  ;;  %v492_v30 = vadd.f32 %v491_v59, %v2166_v50  ;;  %v1673_v42 = vmul.f32 %v1661_v31, %v76_v47  ;;  %v377_v39 = vadd.f32 %v376_v58, %v2167_v63  ;;  %v2168_v32 = vld [vmem:[#allocation17_spill] sm:$0xff]  ;;  %v107_v23 = vld [vmem:[%s2019_s0 + $0x300] sm:$0xff]  ;;  %v2169_v59 = vld [vmem:[#allocation24_spill] sm:$0xff] }
  0x67   :  { %2161 = vst [vmem:[#allocation2_spill] sm:$0xff] %v1647_v57  ;;  %v428_v3 = vsel %vm412_vm0, %v2168_v32, 0.0  ;;  %v537_v14 = vadd.f32 %v536_v49, %v535_v12  ;;  %v320_v10 = vmul.f32 %v2169_v59, %v104_v34  ;;  %v540_v57 = vsel %vm412_vm0, %v1305_v20, 0.0  ;;  %v108_v47 = vld [vmem:[%s2019_s0 + $0x308] sm:$0xff]  ;;  %v2170_v58 = vld [vmem:[#allocation25_spill] sm:$0xff]  ;;  %v2171_v32 = vld [vmem:[#allocation16_spill] sm:$0xff] }
  0x68   :  { %2164 = vst [vmem:[#allocation6_spill] sm:$0xff] %v1661_v31  ;;  %v427_v0 = vadd.f32 %v426_v4, %v425_v41  ;;  %v493_v50 = vadd.f32 %v492_v30, %v1180_v6  ;;  %v1689_v63 = vmul.f32 %v2170_v58, %v105_v18  ;;  %v378_v49 = vadd.f32 %v377_v39, %v2171_v32  ;;  %v2172_v12 = vld [vmem:[#allocation26_spill] sm:$0xff]  ;;  %v109_v6 = vld [vmem:[%s2019_s0 + $0x310] sm:$0xff]  ;;  %v110_v18 = vld [vmem:[%s2019_s0 + $0x318] sm:$0xff] }
  0x69   :  { %2165 = vst [vmem:[#allocation3_spill] sm:$0xff] %v1664_v21  ;;  %v430_v31 = vsel %vm412_vm0, %v2172_v12, 0.0  ;;  %v539_v21 = vadd.f32 %v538_v38, %v537_v14  ;;  %v2173_v30 = vld [vmem:[#allocation30_spill] sm:$0xff]  ;;  %v542_v41 = vsel %vm412_vm0, %v1375_v29, 0.0  ;;  %v2174_v39 = vld [vmem:[#allocation31_spill] sm:$0xff]  ;;  %v2175_v38 = vld [vmem:[#allocation20_spill] sm:$0xff] }
  0x6a   :  { %v322_v34 = vmul.f32 %v2173_v30, %v106_v48  ;;  %v429_v20 = vadd.f32 %v428_v3, %v427_v0  ;;  %v494_v4 = vadd.f32 %v493_v50, %v1262_v11  ;;  %v1705_v59 = vmul.f32 %v2174_v39, %v107_v23  ;;  %v2176_v58 = vld [vmem:[#allocation34_spill] sm:$0xff]  ;;  %v2177_v3 = vld [vmem:[#allocation32_spill] sm:$0xff]  ;;  %v112_v23 = vld [vmem:[%s2019_s0 + $0x328] sm:$0xff] }
  0x6b   :  { %v379_v14 = vadd.f32 %v378_v49, %v2175_v38  ;;  %v432_v32 = vsel %vm412_vm0, %v2176_v58, 0.0  ;;  %v541_v12 = vadd.f32 %v540_v57, %v539_v21  ;;  %v111_v11 = vld [vmem:[%s2019_s0 + $0x320] sm:$0xff]  ;;  %v324_v48 = vmul.f32 %v2177_v3, %v108_v47  ;;  %v2178_v49 = vld [vmem:[#allocation37_spill] sm:$0xff]  ;;  %v2180_v39 = vld [vmem:[#allocation40_spill] sm:$0xff] }
  0x6c   :  { %v431_v29 = vadd.f32 %v430_v31, %v429_v20  ;;  %v495_v0 = vadd.f32 %v494_v4, %v1348_v28  ;;  %v544_v50 = vsel %vm412_vm0, %v1428_v24, 0.0  ;;  %v1721_v30 = vmul.f32 %v2178_v49, %v109_v6  ;;  %v2179_v57 = vld [vmem:[#allocation33_spill] sm:$0xff]  ;;  %v113_v28 = vld [vmem:[%s2019_s0 + $0x330] sm:$0xff]  ;;  %v2181_v31 = vld [vmem:[#allocation38_spill] sm:$0xff] }
  0x6d   :  { %v380_v21 = vadd.f32 %v379_v14, %v2179_v57  ;;  %v434_v38 = vsel %vm412_vm0, %v2180_v39, 0.0  ;;  %v543_v58 = vadd.f32 %v542_v41, %v541_v12  ;;  %v326_v47 = vmul.f32 %v2181_v31, %v110_v18  ;;  %v114_v6 = vld [vmem:[%s2019_s0 + $0x338] sm:$0xff]  ;;  %v2182_v14 = vld [vmem:[#allocation39_spill] sm:$0xff]  ;;  %v2184_v49 = vld [vmem:[#allocation42_spill] sm:$0xff] }
  0x6e   :  { %v433_v24 = vadd.f32 %v432_v32, %v431_v29  ;;  %v496_v20 = vadd.f32 %v495_v0, %v1405_v54  ;;  %v546_v4 = vsel %vm412_vm0, %v1535_v2, 0.0  ;;  %v1737_v3 = vmul.f32 %v2182_v14, %v111_v11  ;;  %v2183_v41 = vld [vmem:[#allocation35_spill] sm:$0xff]  ;;  %v115_v54 = vld [vmem:[%s2019_s0 + $0x340] sm:$0xff] }
  0x6f   :  { %v381_v12 = vadd.f32 %v380_v21, %v2183_v41  ;;  %v436_v57 = vsel %vm412_vm0, %v2184_v49, 0.0  ;;  %v545_v39 = vadd.f32 %v544_v50, %v543_v58  ;;  %v328_v18 = vmul.f32 %v1158_v33, %v112_v23  ;;  %v116_v11 = vld [vmem:[%s2019_s0 + $0x348] sm:$0xff]  ;;  %v2186_v50 = vld [vmem:[#allocation41_spill] sm:$0xff]  ;;  %v2187_v31 = vld [vmem:[#allocation46_spill] sm:$0xff] }
  0x70   :  { %v435_v2 = vadd.f32 %v434_v38, %v433_v24  ;;  %v497_v32 = vadd.f32 %v496_v20, %v1514_v37  ;;  %v548_v29 = vsel %vm412_vm0, %v1596_v5, 0.0  ;;  %v2185_v0 = vld [vmem:[#allocation43_spill] sm:$0xff]  ;;  %v438_v14 = vsel %vm412_vm0, %v2187_v31, 0.0  ;;  %v117_v33 = vld [vmem:[%s2019_s0 + $0x350] sm:$0xff]  ;;  %v2190_v49 = vld [vmem:[#allocation45_spill] sm:$0xff] }
  0x71   :  { %v1753_v21 = vmul.f32 %v2185_v0, %v113_v28  ;;  %v382_v58 = vadd.f32 %v381_v12, %v2186_v50  ;;  %v547_v41 = vadd.f32 %v546_v4, %v545_v39  ;;  %v2188_v37 = vld [vmem:[#allocation44_spill] sm:$0xff]  ;;  %v550_v24 = vsel %vm412_vm0, %v320_v10, 0.0  ;;  %v118_v28 = vld [vmem:[%s2019_s0 + $0x358] sm:$0xff]  ;;  %v2191_v4 = vld [vmem:[#allocation51_spill] sm:$0xff] }
  0x72   :  { %v330_v23 = vmul.f32 %v2188_v37, %v114_v6  ;;  %v437_v5 = vadd.f32 %v436_v57, %v435_v2  ;;  %v498_v38 = vadd.f32 %v497_v32, %v1574_v9  ;;  %v2189_v20 = vld [vmem:[#allocation48_spill] sm:$0xff]  ;;  %v440_v39 = vsel %vm412_vm0, %v2191_v4, 0.0  ;;  %v119_v6 = vld [vmem:[%s2019_s0 + $0x360] sm:$0xff]  ;;  %v2192_v57 = vld [vmem:[#allocation49_spill] sm:$0xff] }
  0x73   :  { %v331_v12 = vmul.f32 %v2189_v20, %v115_v54  ;;  %v383_v0 = vadd.f32 %v382_v58, %v2190_v49  ;;  %v549_v50 = vadd.f32 %v548_v29, %v547_v41  ;;  %v332_v9 = vmul.f32 %v2192_v57, %v116_v11  ;;  %v120_v54 = vld [vmem:[%s2019_s0 + $0x368] sm:$0xff]  ;;  %v2193_v58 = vld [vmem:[#allocation50_spill] sm:$0xff]  ;;  %v2195_v29 = vld [vmem:[#allocation53_spill] sm:$0xff] }
  0x74   :  { %v439_v2 = vadd.f32 %v438_v14, %v437_v5  ;;  %v499_v10 = vadd.f32 %v498_v38, %v1650_v1  ;;  %v552_v32 = vsel %vm412_vm0, %v322_v34, 0.0  ;;  %v333_v31 = vmul.f32 %v2193_v58, %v117_v33  ;;  %v2194_v37 = vld [vmem:[#allocation47_spill] sm:$0xff]  ;;  %v2196_v4 = vld [vmem:[#allocation54_spill] sm:$0xff]  ;;  %v121_v34 = vld [vmem:[%s2019_s0 + $0x370] sm:$0xff] }
  0x75   :  { %v384_v20 = vadd.f32 %v383_v0, %v2194_v37  ;;  %v442_v41 = vsel %vm412_vm0, %v2195_v29, 0.0  ;;  %v551_v49 = vadd.f32 %v550_v24, %v549_v50  ;;  %v334_v26 = vmul.f32 %v2196_v4, %v118_v28  ;;  %v2197_v5 = vld [vmem:[#allocation55_spill] sm:$0xff]  ;;  %v2198_v33 = vld [vmem:[#allocation52_spill] sm:$0xff]  ;;  %v2199_v0 = vld [vmem:[#allocation58_spill] sm:$0xff] }
  0x76   :  { %v441_v11 = vadd.f32 %v440_v39, %v439_v2  ;;  %v500_v14 = vadd.f32 %v499_v10, %v1689_v63  ;;  %v554_v1 = vsel %vm412_vm0, %v324_v48, 0.0  ;;  %v335_v38 = vmul.f32 %v2197_v5, %v119_v6  ;;  %v2200_v24 = vld [vmem:[#allocation56_spill] sm:$0xff]  ;;  %v122_v48 = vld [vmem:[%s2019_s0 + $0x378] sm:$0xff]  ;;  %v2203_v4 = vld [vmem:[#allocation59_spill] sm:$0xff] }
  0x77   :  { %v385_v57 = vadd.f32 %v384_v20, %v2198_v33  ;;  %v444_v58 = vsel %vm412_vm0, %v2199_v0, 0.0  ;;  %v553_v37 = vadd.f32 %v552_v32, %v551_v49  ;;  %v336_v50 = vmul.f32 %v2200_v24, %v120_v54  ;;  %v2201_v2 = vld [vmem:[#allocation57_spill] sm:$0xff]  ;;  %v123_v49 = vld [vmem:[%s2019_s0 + $0x380] sm:$0xff]  ;;  %v2207_v24 = vld [vmem:[#allocation27_spill] sm:$0xff] }
  0x78   :  { %v443_v28 = vadd.f32 %v442_v41, %v441_v11  ;;  %v501_v39 = vadd.f32 %v500_v14, %v1705_v59  ;;  %v556_v63 = vsel %vm412_vm0, %v326_v47, 0.0  ;;  %v2202_v6 = vld [vmem:[#allocation61_spill] sm:$0xff]  ;;  %v1805_v29 = vsel %vm412_vm0, %v1673_v42, 0.0  ;;  %v2204_v14 = vld [vmem:[#allocation63_spill] sm:$0xff]  ;;  %v2205_v33 = vld [vmem:[#allocation22_spill] sm:$0xff] }
  0x79   :  { %v386_v10 = vadd.f32 %v385_v57, %v2201_v2  ;;  %v446_v20 = vsel %vm412_vm0, %v2202_v6, 0.0  ;;  %v555_v32 = vadd.f32 %v554_v1, %v553_v37  ;;  %v337_v54 = vmul.f32 %v1279_v44, %v121_v34  ;;  %v124_v57 = vld [vmem:[%s2019_s0 + $0x388] sm:$0xff]  ;;  %v2206_v0 = vld [vmem:[#allocation62_spill] sm:$0xff] }
  0x7a   :  { %v445_v41 = vadd.f32 %v444_v58, %v443_v28  ;;  %v502_v59 = vadd.f32 %v501_v39, %v1721_v30  ;;  %v558_v47 = vsel %vm412_vm0, %v328_v18, 0.0  ;;  %v448_v5 = vsel %vm412_vm0, %v2204_v14, 0.0 }
  0x7b   :  { %v387_v11 = vadd.f32 %v386_v10, %v2203_v4  ;;  %v1818_v42 = vsel %vm412_vm0, %v2205_v33, 0.0  ;;  %v557_v1 = vadd.f32 %v556_v63, %v555_v32  ;;  %v338_v44 = vmul.f32 %v1284_v40, %v122_v48  ;;  %v125_v40 = vld [vmem:[%s2019_s0 + $0x390] sm:$0xff]  ;;  %v2209_v10 = vld [vmem:[#allocation65_spill] sm:$0xff] }
  0x7c   :  { %v447_v34 = vadd.f32 %v446_v20, %v445_v41  ;;  %v503_v30 = vadd.f32 %v502_v59, %v1737_v3  ;;  %v560_v18 = vsel %vm412_vm0, %v330_v23, 0.0  ;;  %v450_v37 = vsel %vm412_vm0, %v1340_v60, 0.0  ;;  %v2208_v3 = vld [vmem:[#allocation60_spill] sm:$0xff]  ;;  %v2210_v20 = vld [vmem:[#allocation29_spill] sm:$0xff] }
  0x7d   :  { %v388_v58 = vadd.f32 %v387_v11, %v2206_v0  ;;  %v1831_v28 = vsel %vm412_vm0, %v2207_v24, 0.0  ;;  %v559_v39 = vadd.f32 %v558_v47, %v557_v1  ;;  %v339_v23 = vmul.f32 %v2208_v3, %v123_v49  ;;  %v126_v59 = vld [vmem:[%s2019_s0 + $0x398] sm:$0xff]  ;;  %v2211_v11 = vld [vmem:[#allocation66_spill] sm:$0xff]  ;;  %v128_v1 = vld [vmem:[%s2019_s0 + $0x3a8] sm:$0xff] }
  0x7e   :  { %v449_v63 = vadd.f32 %v448_v5, %v447_v34  ;;  %v504_v48 = vadd.f32 %v503_v30, %v1753_v21  ;;  %v562_v2 = vsel %vm412_vm0, %v332_v9, 0.0  ;;  %v452_v60 = vsel %vm412_vm0, %v1366_v61, 0.0  ;;  %v2212_v61 = vld [vmem:[#allocation69_spill] sm:$0xff] }
  0x7f   :  { %v389_v6 = vadd.f32 %v388_v58, %v2209_v10  ;;  %v1844_v32 = vsel %vm412_vm0, %v2210_v20, 0.0  ;;  %v561_v41 = vadd.f32 %v560_v18, %v559_v39  ;;  %v340_v47 = vmul.f32 %v1322_v45, %v124_v57  ;;  %v2214_v18 = vld [vmem:[#allocation68_spill] sm:$0xff]  ;;  %v130_v39 = vld [vmem:[%s2019_s0 + $0x3b8] sm:$0xff] }
  0x80   :  { %v451_v49 = vadd.f32 %v450_v37, %v449_v63  ;;  %v505_v21 = vadd.f32 %v504_v48, %v331_v12  ;;  %v564_v9 = vsel %vm412_vm0, %v334_v26, 0.0  ;;  %v341_v4 = vmul.f32 %v1327_v51, %v125_v40  ;;  %v2213_v26 = vld [vmem:[#allocation64_spill] sm:$0xff]  ;;  %v127_v37 = vld [vmem:[%s2019_s0 + $0x3a0] sm:$0xff] }
  0x81   :  { %v390_v14 = vadd.f32 %v389_v6, %v2211_v11  ;;  %v454_v5 = vsel %vm412_vm0, %v2212_v61, 0.0  ;;  %v563_v33 = vadd.f32 %v562_v2, %v561_v41  ;;  %v566_v45 = vsel %vm412_vm0, %v336_v50, 0.0  ;;  %v2217_v11 = vld [vmem:[#allocation71_spill] sm:$0xff] }
  0x82   :  { %v453_v34 = vadd.f32 %v452_v60, %v451_v49  ;;  %v506_v30 = vadd.f32 %v505_v21, %v333_v31  ;;  %v1861_v12 = vsel %vm412_vm0, %v1449_v15, 0.0  ;;  %v342_v51 = vmul.f32 %v2213_v26, %v126_v59 }
  0x83   :  { %v391_v57 = vadd.f32 %v390_v14, %v2214_v18  ;;  %v456_v0 = vsel %vm412_vm0, %v1399_v8, 0.0  ;;  %v565_v58 = vadd.f32 %v564_v9, %v563_v33  ;;  %v568_v50 = vsel %vm412_vm0, %v338_v44, 0.0  ;;  %v136_v33 = vld [vmem:[%s2019_s0 + $0x3e8] sm:$0xff] }
  0x84   :  { %v455_v24 = vadd.f32 %v454_v5, %v453_v34  ;;  %v507_v31 = vadd.f32 %v506_v30, %v335_v38  ;;  %v1873_v15 = vsel %vm412_vm0, %v1464_v22, 0.0  ;;  %v344_v40 = vmul.f32 %v1358_v13, %v128_v1  ;;  %v129_v38 = vld [vmem:[%s2019_s0 + $0x3b0] sm:$0xff]  ;;  %v132_v13 = vld [vmem:[%s2019_s0 + $0x3c8] sm:$0xff]  ;;  %v2218_v1 = vld [vmem:[#allocation70_spill] sm:$0xff] }
  0x85   :  { %v392_v8 = vadd.f32 %v391_v57, %v1396_v55  ;;  %v458_v3 = vsel %vm412_vm0, %v1419_v52, 0.0  ;;  %v567_v63 = vadd.f32 %v566_v45, %v565_v58  ;;  %v570_v22 = vsel %vm412_vm0, %v340_v47, 0.0  ;;  %v2215_v52 = vld [vmem:[#allocation72_spill] sm:$0xff]  ;;  %v2216_v47 = vld [vmem:[#allocation67_spill] sm:$0xff]  ;;  %v135_v45 = vld [vmem:[%s2019_s0 + $0x3e0] sm:$0xff] }
  0x86   :  { %v457_v44 = vadd.f32 %v456_v0, %v455_v24  ;;  %v508_v48 = vadd.f32 %v507_v31, %v337_v54  ;;  %v1888_v2 = vsel %vm412_vm0, %v1470_v7, 0.0  ;;  %v343_v55 = vmul.f32 %v1353_v43, %v127_v37  ;;  %v131_v54 = vld [vmem:[%s2019_s0 + $0x3c0] sm:$0xff]  ;;  %v134_v43 = vld [vmem:[%s2019_s0 + $0x3d8] sm:$0xff] }
  0x87   :  { %v393_v10 = vadd.f32 %v392_v8, %v2215_v52  ;;  %v460_v6 = vsel %vm412_vm0, %v1425_v56, 0.0  ;;  %v569_v60 = vadd.f32 %v568_v50, %v567_v63  ;;  %v346_v20 = vmul.f32 %v1383_v16, %v130_v39  ;;  %v133_v16 = vld [vmem:[%s2019_s0 + $0x3d0] sm:$0xff]  ;;  %v138_v57 = vld [vmem:[%s2019_s0 + $0x3f8] sm:$0xff]  ;;  %v2223_v52 = vld [vmem:[#allocation78_spill] sm:$0xff] }
  0x88   :  { %v459_v7 = vadd.f32 %v458_v3, %v457_v44  ;;  %v509_v41 = vadd.f32 %v508_v48, %v339_v23  ;;  %v572_v59 = vsel %vm412_vm0, %v342_v51, 0.0  ;;  %v345_v49 = vmul.f32 %v2216_v47, %v129_v38  ;;  %v2219_v39 = vld [vmem:[#allocation77_spill] sm:$0xff]  ;;  %v2222_v38 = vld [vmem:[#allocation79_spill] sm:$0xff] }
  0x89   :  { %v394_v21 = vadd.f32 %v393_v10, %v1422_v19  ;;  %v462_v56 = vsel %vm412_vm0, %v1508_v35, 0.0  ;;  %v571_v9 = vadd.f32 %v570_v22, %v569_v60  ;;  %v348_v23 = vmul.f32 %v2217_v11, %v132_v13  ;;  %v2228_v11 = vld [vmem:[#allocation88_spill] sm:$0xff] }
  0x8a   :  { %v461_v14 = vadd.f32 %v460_v6, %v459_v7  ;;  %v510_v61 = vadd.f32 %v509_v41, %v341_v4  ;;  %v574_v5 = vsel %vm412_vm0, %v344_v40, 0.0  ;;  %v347_v19 = vmul.f32 %v2218_v1, %v131_v54  ;;  %v2220_v40 = vld [vmem:[#allocation82_spill] sm:$0xff]  ;;  %v2224_v6 = vld [vmem:[#allocation83_spill] sm:$0xff]  ;;  %v2225_v54 = vld [vmem:[#allocation89_spill] sm:$0xff] }
  0x8b   :  { %v395_v34 = vadd.f32 %v394_v21, %v1440_v62  ;;  %v464_v35 = vsel %vm412_vm0, %v1532_v17, 0.0  ;;  %v573_v30 = vadd.f32 %v572_v59, %v571_v9  ;;  %v350_v4 = vmul.f32 %v1481_v25, %v134_v43  ;;  %v137_v25 = vld [vmem:[%s2019_s0 + $0x3f0] sm:$0xff]  ;;  %v2226_v59 = vld [vmem:[#allocation81_spill] sm:$0xff] }
  0x8c   :  { %v463_v26 = vadd.f32 %v462_v56, %v461_v14  ;;  %v511_v51 = vadd.f32 %v510_v61, %v343_v55  ;;  %v576_v18 = vsel %vm412_vm0, %v346_v20, 0.0  ;;  %v349_v62 = vmul.f32 %v1416_v53, %v133_v16  ;;  %v140_v53 = vld [vmem:[%s2019_s0 + $0x408] sm:$0xff]  ;;  %v142_v55 = vld [vmem:[%s2019_s0 + $0x418] sm:$0xff]  ;;  %v141_v41 = vld [vmem:[%s2019_s0 + $0x410] sm:$0xff] }
  0x8d   :  { %v396_v0 = vadd.f32 %v395_v34, %v1511_v36  ;;  %v466_v17 = vsel %vm412_vm0, %v1555_v46, 0.0  ;;  %v575_v58 = vadd.f32 %v574_v5, %v573_v30  ;;  %v352_v37 = vmul.f32 %v1505_v27, %v136_v33  ;;  %v2221_v46 = vld [vmem:[#allocation86_spill] sm:$0xff]  ;;  %v144_v56 = vld [vmem:[%s2019_s0 + $0x428] sm:$0xff]  ;;  %v2227_v9 = vld [vmem:[#allocation80_spill] sm:$0xff] }
  0x8e   :  { %v465_v24 = vadd.f32 %v464_v35, %v463_v26  ;;  %v512_v31 = vadd.f32 %v511_v51, %v345_v49  ;;  %v578_v50 = vsel %vm412_vm0, %v348_v23, 0.0  ;;  %v351_v36 = vmul.f32 %v2219_v39, %v135_v45  ;;  %v139_v27 = vld [vmem:[%s2019_s0 + $0x400] sm:$0xff]  ;;  %v2230_v1 = vld [vmem:[#allocation85_spill] sm:$0xff]  ;;  %v2232_v51 = vld [vmem:[#allocation11_spill] sm:$0xff] }
  0x8f   :  { %v397_v8 = vadd.f32 %v396_v0, %v2220_v40  ;;  %v468_v3 = vsel %vm412_vm0, %v2221_v46, 0.0  ;;  %v577_v63 = vadd.f32 %v576_v18, %v575_v58  ;;  %v354_v44 = vmul.f32 %v2222_v38, %v138_v57  ;;  %v2229_v14 = vld [vmem:[#allocation90_spill] sm:$0xff]  ;;  %v146_v45 = vld [vmem:[%s2019_s0 + $0x438] sm:$0xff]  ;;  %v2233_v57 = vld [vmem:[#allocation3_spill] sm:$0xff] }
  0x90   :  { %v467_v48 = vadd.f32 %v466_v17, %v465_v24  ;;  %v513_v22 = vadd.f32 %v512_v31, %v347_v19  ;;  %v580_v13 = vsel %vm412_vm0, %v350_v4, 0.0  ;;  %v353_v10 = vmul.f32 %v2223_v52, %v137_v25  ;;  %v143_v33 = vld [vmem:[%s2019_s0 + $0x420] sm:$0xff]  ;;  %v2231_v4 = vld [vmem:[#allocation84_spill] sm:$0xff]  ;;  %v2234_v58 = vld [vmem:[#allocation87_spill] sm:$0xff] }
  0x91   :  { %v398_v60 = vadd.f32 %v397_v8, %v2224_v6  ;;  %v470_v20 = vsel %vm412_vm0, %v2225_v54, 0.0  ;;  %v579_v7 = vadd.f32 %v578_v50, %v577_v63  ;;  %v356_v43 = vmul.f32 %v2226_v59, %v140_v53  ;;  %v145_v17 = vld [vmem:[%s2019_s0 + $0x430] sm:$0xff]  ;;  %v148_v50 = vld [vmem:[%s2019_s0 + $0x448] sm:$0xff]  ;;  %v2235_v53 = vld [vmem:[#allocation5_spill] sm:$0xff] }
  0x92   :  { %v469_v47 = vadd.f32 %v468_v3, %v467_v48  ;;  %v514_v49 = vadd.f32 %v513_v22, %v349_v62  ;;  %v582_v21 = vsel %vm412_vm0, %v352_v37, 0.0  ;;  %v355_v16 = vmul.f32 %v2227_v9, %v139_v27  ;;  %v2237_v46 = vld [vmem:[#allocation2_spill] sm:$0xff] }
  0x93   :  { %v399_v23 = vadd.f32 %v398_v60, %v2228_v11  ;;  %v472_v61 = vsel %vm412_vm0, %v2229_v14, 0.0  ;;  %v581_v5 = vadd.f32 %v580_v13, %v579_v7  ;;  %v358_v19 = vmul.f32 %v2230_v1, %v142_v55  ;;  %v2239_v22 = vld [vmem:[#allocation18_spill] sm:$0xff] }
  0x94   :  { %v471_v34 = vadd.f32 %v470_v20, %v469_v47  ;;  %v515_v35 = vadd.f32 %v514_v49, %v351_v36  ;;  %v584_v30 = vsel %vm412_vm0, %v354_v44, 0.0  ;;  %v357_v26 = vmul.f32 %v2231_v4, %v141_v41  ;;  %v2236_v36 = vld [vmem:[#allocation8_spill] sm:$0xff]  ;;  %v2240_v52 = vld [vmem:[#allocation6_spill] sm:$0xff]  ;;  %v2241_v20 = vld [vmem:[#allocation21_spill] sm:$0xff] }
  0x95   :  { %v400_v18 = vadd.f32 %v399_v23, %v2232_v51  ;;  %v474_v62 = vsel %vm412_vm0, %v2233_v57, 0.0  ;;  %v583_v0 = vadd.f32 %v582_v21, %v581_v5  ;;  %v360_v25 = vmul.f32 %v2234_v58, %v144_v56  ;;  %v2238_v44 = vld [vmem:[#allocation4_spill] sm:$0xff]  ;;  %v2242_v49 = vld [vmem:[#allocation23_spill] sm:$0xff]  ;;  %v2244_v5 = vld [vmem:[#allocation73_spill] sm:$0xff] }
  0x96   :  { %v473_v37 = vadd.f32 %v472_v61, %v471_v34  ;;  %v516_v24 = vadd.f32 %v515_v35, %v353_v10  ;;  %v586_v31 = vsel %vm412_vm0, %v356_v43, 0.0  ;;  %v359_v39 = vmul.f32 %v2235_v53, %v143_v33  ;;  %v2245_v34 = vld [vmem:[#allocation74_spill] sm:$0xff] }
  0x97   :  { %v401_v40 = vadd.f32 %v400_v18, %v2236_v36  ;;  %v585_v8 = vadd.f32 %v584_v30, %v583_v0  ;;  %v362_v3 = vmul.f32 %v2237_v46, %v146_v45  ;;  %v588_v38 = vsel %vm412_vm0, %v358_v19, 0.0 }
  0x98   :  { %v475_v63 = vadd.f32 %v474_v62, %v473_v37  ;;  %v517_v27 = vadd.f32 %v516_v24, %v355_v16  ;;  %v361_v48 = vmul.f32 %v2238_v44, %v145_v17  ;;  %v364_v10 = vmul.f32 %v2240_v52, %v148_v50  ;;  %v2247_v62 = vld [vmem:[#allocation76_spill] sm:$0xff] }
  0x99   :  { %v402_v13 = vadd.f32 %v401_v40, %v2239_v22  ;;  %v587_v55 = vadd.f32 %v586_v31, %v585_v8  ;;  %v590_v54 = vsel %vm412_vm0, %v360_v25, 0.0  ;;  %v592_v47 = vsel %vm412_vm0, %v362_v3, 0.0 }
  0x9a   :  { %v477_v6 = vadd.f32 %v1805_v29, %v475_v63  ;;  %v518_v60 = vadd.f32 %v517_v27, %v357_v26  ;;  %v594_v11 = vsel %vm412_vm0, %v364_v10, 0.0  ;;  %v2243_v29 = vld [vmem:[#allocation28_spill] sm:$0xff] }
  0x9b   :  { %v403_v7 = vadd.f32 %v402_v13, %v2241_v20  ;;  %v589_v41 = vadd.f32 %v588_v38, %v587_v55 }
  0x9c   :  { %v479_v59 = vadd.f32 %v1818_v42, %v477_v6  ;;  %v519_v43 = vadd.f32 %v518_v60, %v359_v39 }
  0x9d   :  { %v404_v21 = vadd.f32 %v403_v7, %v2242_v49  ;;  %v591_v56 = vadd.f32 %v590_v54, %v589_v41 }
  0x9e   :  { %v481_v9 = vadd.f32 %v1831_v28, %v479_v59  ;;  %v520_v16 = vadd.f32 %v519_v43, %v361_v48  ;;  %v2246_v28 = vld [vmem:[#allocation75_spill] sm:$0xff] }
  0x9f   :  { %v405_v23 = vadd.f32 %v404_v21, %v2243_v29  ;;  %v593_v14 = vadd.f32 %v592_v47, %v591_v56 }
  0xa0   :  { %v483_v61 = vadd.f32 %v1844_v32, %v481_v9  ;;  %v521_v33 = vadd.f32 %v520_v16, %v2244_v5 }
  0xa1   :  { %v406_v1 = vrot.slane %v405_v23, 4  ;;  %v595_v42 = vadd.f32 %v594_v11, %v593_v14 }
  0xa2   :  { %v484_v19 = vrot.slane %v483_v61, 4  ;;  %v522_v35 = vadd.f32 %v521_v33, %v2245_v34 }
  0xa3   :  { %v407_v30 = vadd.f32 %v406_v1, %v405_v23  ;;  %v597_v45 = vadd.f32 %v1861_v12, %v595_v42 }
  0xa4   :  { %v485_v4 = vadd.f32 %v484_v19, %v483_v61  ;;  %v523_v26 = vadd.f32 %v522_v35, %v2246_v28 }
  0xa5   :  { %v408_v51 = vrot.slane %v407_v30, 2  ;;  %v599_v18 = vadd.f32 %v1873_v15, %v597_v45 }
  0xa6   :  { %v486_v57 = vrot.slane %v485_v4, 2  ;;  %v524_v0 = vadd.f32 %v523_v26, %v2247_v62 }
  0xa7   :  { %v409_v32 = vadd.f32 %v408_v51, %v407_v30  ;;  %v601_v17 = vadd.f32 %v1888_v2, %v599_v18 }
  0xa8   :  { %v487_v58 = vadd.f32 %v486_v57, %v485_v4  ;;  %v525_v25 = vrot.slane %v524_v0, 4 }
  0xa9   :  { %v410_v37 = vrot.slane %v409_v32, 1  ;;  %v602_v24 = vrot.slane %v601_v17, 4 }
  0xaa   :  { %v488_v31 = vrot.slane %v487_v58, 1  ;;  %v526_v50 = vadd.f32 %v525_v25, %v524_v0 }
  0xab   :  { %v603_v53 = vadd.f32 %v602_v24, %v601_v17  ;;  %v411_v12 = vadd.f32 %v410_v37, %v409_v32 }
  0xac   :  { %v489_v39 = vadd.f32 %v488_v31, %v487_v58  ;;  %v527_v36 = vrot.slane %v526_v50, 2 }
  0xad   :  { %v604_v40 = vrot.slane %v603_v53, 2 }
  0xae   :  { %v528_v8 = vadd.f32 %v527_v36, %v526_v50  ;;  %v612_v46 = vrot.slane %v489_v39, 6 }
  0xaf   :  { %v605_v15 = vadd.f32 %v604_v40, %v603_v53 }
  0xb0   :  { %v529_v3 = vrot.slane %v528_v8, 1  ;;  %v615_v63 = vsel %vm614_vm1, %v411_v12, %v612_v46 }
  0xb1   :  { %v606_v27 = vrot.slane %v605_v15, 1 }
  0xb2   :  { %v530_v2 = vadd.f32 %v529_v3, %v528_v8 }
  0xb3   :  { %v607_v38 = vadd.f32 %v606_v27, %v605_v15 }
  0xb5   :  { %v613_v44 = vrot.slane %v607_v38, 6 }
  0xb7   :  { %v616_v48 = vsel %vm614_vm1, %v530_v2, %v613_v44 }
  0xb8   :  { %v621_v22 = vrot.slane %v616_v48, 7 }
  0xba   :  { %v623_v13 = vsel %vm622_vm2, %v621_v22, %v615_v63 }
  0xbb   :  { %v625_v55 = vsel %vm624_vm3, %v621_v22, %v623_v13 }
  0xbc   :  { %v627_v52 = vsel %vm626_vm5, %v621_v22, %v625_v55 }
  0xbd   :  { %v629_v10 = vsel %vm628_vm6, %v621_v22, %v627_v52 }
  0xbe   :  { %633 = vst.msk [vmem:[%s2021_s2] sm:$0xf] %vm632_vm7, %v629_v10 }

</bundles_post_ra>
